<compile_context>
chip_gen: v7x
topology: tpu7x:2x2x1
jax: 0.10.0
libtpu: 0.0.40
codegen_flags: <defaults>
</compile_context>

<pallas_src>
import functools

import numpy as np
import jax
import jax.numpy as jnp
from jax import lax
from jax.experimental import pallas as pl
from jax.experimental.pallas import tpu as pltpu

# Full-f32 matmul/conv precision for both the kernel and the XLA reference so
# they agree to ~1e-6 (see NOTE above about relaxing on v6e/v7x).
jax.config.update("jax_default_matmul_precision", "highest")

BN_EPS = 1e-3  # Ultralytics BatchNorm2d eps


def _make_tap_masks(H, W):
    """(9, H*W) f32 masks: 1.0 where the (di,dj)-shifted tap is in-bounds."""
    masks = np.zeros((9, H, W), np.float32)
    rows = np.arange(H)[:, None]
    cols = np.arange(W)[None, :]
    t = 0
    for di in (-1, 0, 1):
        for dj in (-1, 0, 1):
            valid = ((rows + di >= 0) & (rows + di < H) &
                     (cols + dj >= 0) & (cols + dj < W))
            masks[t] = valid.astype(np.float32)
            t += 1
    return masks.reshape(9, H * W)


def _simfusion_kernel(W, HW, NB,
                      x_ref,      # (NB, C1, HW)    input block, spatial in lanes
                      w1_ref,     # (C2, C1)        BN1-folded 1x1 conv weight
                      b1_ref,     # (C2, 1)         BN1 bias
                      w2s_ref,    # (C2, 9*C2)      BN2-folded 3x3 weight, tap-stacked
                      b2_ref,     # (C2, 1)         BN2 bias
                      maskb_ref,  # (9*C2, NB*HW)   boundary masks, pre-broadcast
                      wfc1t_ref,  # (C2, R)         SE fc1 weight, transposed
                      wfc2_ref,   # (C2, R)         SE fc2 weight
                      o_ref):     # (NB, C2, HW)
    L = NB * HW

    # Fold the batch block into the lane axis: (NB, C1, HW) -> (C1, NB*HW).
    if NB == 1:
        x = x_ref[0].astype(jnp.float32)
    else:
        x = jnp.concatenate([x_ref[n] for n in range(NB)],
                            axis=1).astype(jnp.float32)

    # ---- cv1: 1x1 conv (BN folded) + SiLU ---------------------------------
    y1 = jnp.dot(w1_ref[...], x, preferred_element_type=jnp.float32) + b1_ref[...]
    y1 = y1 * jax.nn.sigmoid(y1)                                       # (C2, L)

    # ---- cv2: 3x3 conv, pad=1 (BN folded) + SiLU --------------------------
    # Single stacked matmul: the im2col operand is 9 lane-rolls of y1 stacked
    # along sublanes; zero padding (and the seams between images fused into
    # the lane axis) is one multiply by the pre-broadcast boundary mask.
    taps = []
    for di in (-1, 0, 1):
        for dj in (-1, 0, 1):
            off = di * W + dj
            taps.append(y1 if off == 0
                        else pltpu.roll(y1, shift=(-off) % L, axis=1))
    t_stack = jnp.concatenate(taps, axis=0) * maskb_ref[...]           # (9*C2, L)
    y2 = jnp.dot(w2s_ref[...], t_stack,
                 preferred_element_type=jnp.float32) + b2_ref[...]
    y2 = y2 * jax.nn.sigmoid(y2)                                       # (C2, L)

    # ---- SE block (strictly per image) + gated output store ---------------
    for n in range(NB):
        y2n = y2[:, n * HW:(n + 1) * HW]                               # (C2, HW)
        pooled = jnp.mean(y2n, axis=1, keepdims=True)                  # (C2, 1)
        h = jnp.sum(wfc1t_ref[...] * pooled, axis=0, keepdims=True)    # (1, R)
        h = h * jax.nn.sigmoid(h)                                      # SiLU
        gate = jax.nn.sigmoid(
            jnp.sum(wfc2_ref[...] * h, axis=1, keepdims=True))         # (C2, 1)
        o_ref[n] = (y2n * gate).astype(o_ref.dtype)


def simfusion(x, params):
    """x: (N, C1, H, W) NCHW float32. Returns (N, C2, H, W)."""
    N, C1, H, W = x.shape
    HW = H * W
    C2 = params["conv1_w"].shape[0]
    R = params["fc1_w"].shape[0]

    # Fold eval-mode BatchNorm into the bias-free convs (scale into weights,
    # offset as a per-channel bias).
    s1 = params["bn1_gamma"] * lax.rsqrt(params["bn1_var"] + BN_EPS)
    b1 = params["bn1_beta"] - params["bn1_mean"] * s1
    s2 = params["bn2_gamma"] * lax.rsqrt(params["bn2_var"] + BN_EPS)
    b2 = params["bn2_beta"] - params["bn2_mean"] * s2

    w1_eff = (params["conv1_w"].reshape(C2, C1) * s1[:, None]).astype(jnp.float32)
    w2_eff = params["conv2_w"] * s2[:, None, None, None]          # (C2o, C2i, 3, 3)
    # Tap-stacked 3x3 weight: column index = tap*C2 + ci (matches kernel order).
    w2_stacked = jnp.transpose(w2_eff, (0, 2, 3, 1)).reshape(C2, 9 * C2)
    w2_stacked = w2_stacked.astype(jnp.float32)
    b1_eff = b1.reshape(C2, 1).astype(jnp.float32)
    b2_eff = b2.reshape(C2, 1).astype(jnp.float32)
    wfc1_t = jnp.transpose(params["fc1_w"]).astype(jnp.float32)   # (C2, R)
    wfc2 = params["fc2_w"].astype(jnp.float32)                    # (C2, R)

    # Grid blocking: fewer, fatter steps; keep 2 steps (when possible) so the
    # "parallel" grid axis feeds both TensorCores on v7x.
    GB = 2 if N >= 2 else 1
    NB = -(-N // GB)                    # images fused into lanes per step
    N_pad = GB * NB
    L = NB * HW

    x_flat = x.reshape(N, C1, HW)       # lane-dense spatial layout (free reshape)
    if N_pad != N:
        x_flat = jnp.pad(x_flat, ((0, N_pad - N), (0, 0), (0, 0)))

    # Per-tap boundary masks: tiled over the NB images fused into the lane
    # axis and pre-broadcast over channels (row index = tap*C2 + channel), so
    # the kernel needs no in-loop broadcasts.
    tap_masks = _make_tap_masks(H, W)                 # (9, HW)
    mask_tiled = np.tile(tap_masks, (1, NB))          # (9, L)
    maskb = jnp.asarray(
        np.repeat(mask_tiled[:, None, :], C2, axis=1).reshape(9 * C2, L))

    out_flat = pl.pallas_call(
        functools.partial(_simfusion_kernel, W, HW, NB),
        out_shape=jax.ShapeDtypeStruct((N_pad, C2, HW), x.dtype),
        grid=(GB,),
        in_specs=[
            pl.BlockSpec((NB, C1, HW), lambda g: (g, 0, 0)),      # x
            pl.BlockSpec((C2, C1), lambda g: (0, 0)),             # w1 (folded)
            pl.BlockSpec((C2, 1), lambda g: (0, 0)),              # b1
            pl.BlockSpec((C2, 9 * C2), lambda g: (0, 0)),         # w2 (stacked)
            pl.BlockSpec((C2, 1), lambda g: (0, 0)),              # b2
            pl.BlockSpec((9 * C2, L), lambda g: (0, 0)),          # tap masks
            pl.BlockSpec((C2, R), lambda g: (0, 0)),              # fc1^T
            pl.BlockSpec((C2, R), lambda g: (0, 0)),              # fc2
        ],
        out_specs=pl.BlockSpec((NB, C2, HW), lambda g: (g, 0, 0)),
        compiler_params=pltpu.CompilerParams(
            dimension_semantics=("parallel",),
            vmem_limit_bytes=32 * 1024 * 1024,
        ),
    )(x_flat, w1_eff, b1_eff, w2_stacked, b2_eff, maskb, wfc1_t, wfc2)

    return out_flat[:N].reshape(N, C2, H, W)


def _reference(x, params):
    """Pure-JAX reference with PyTorch (eval-mode) semantics."""
    def conv_bn_silu(inp, w, gamma, beta, mean, var, pad):
        y = lax.conv_general_dilated(
            inp, w, window_strides=(1, 1),
            padding=((pad, pad), (pad, pad)),
            dimension_numbers=("NCHW", "OIHW", "NCHW"))
        s = gamma * lax.rsqrt(var + BN_EPS)
        b = beta - mean * s
        y = y * s[None, :, None, None] + b[None, :, None, None]
        return y * jax.nn.sigmoid(y)

    y = conv_bn_silu(x, params["conv1_w"], params["bn1_gamma"], params["bn1_beta"],
                     params["bn1_mean"], params["bn1_var"], 0)
    y = conv_bn_silu(y, params["conv2_w"], params["bn2_gamma"], params["bn2_beta"],
                     params["bn2_mean"], params["bn2_var"], 1)
    p = jnp.mean(y, axis=(2, 3))                         # (N, C2) global avg pool
    h = p @ params["fc1_w"].T
    h = h * jax.nn.sigmoid(h)
    gate = jax.nn.sigmoid(h @ params["fc2_w"].T)         # (N, C2)
    return y * gate[:, :, None, None]


if __name__ == "__main__":
    key = jax.random.PRNGKey(0)
    ks = jax.random.split(key, 13)

    N, C1, C2, H, W = 2, 4, 8, 16, 16
    R = max(C2 // 16, 8)   # SEBlock reduced channels

    x = jax.random.normal(ks[0], (N, C1, H, W), dtype=jnp.float32)
    params = {
        "conv1_w": 0.3 * jax.random.normal(ks[1], (C2, C1, 1, 1), jnp.float32),
        "conv2_w": 0.2 * jax.random.normal(ks[2], (C2, C2, 3, 3), jnp.float32),
        "bn1_gamma": 1.0 + 0.1 * jax.random.normal(ks[3], (C2,), jnp.float32),
        "bn1_beta": 0.1 * jax.random.normal(ks[4], (C2,), jnp.float32),
        "bn1_mean": 0.1 * jax.random.normal(ks[5], (C2,), jnp.float32),
        "bn1_var": 0.5 + jnp.abs(jax.random.normal(ks[6], (C2,), jnp.float32)),
        "bn2_gamma": 1.0 + 0.1 * jax.random.normal(ks[7], (C2,), jnp.float32),
        "bn2_beta": 0.1 * jax.random.normal(ks[8], (C2,), jnp.float32),
        "bn2_mean": 0.1 * jax.random.normal(ks[9], (C2,), jnp.float32),
        "bn2_var": 0.5 + jnp.abs(jax.random.normal(ks[10], (C2,), jnp.float32)),
        "fc1_w": 0.3 * jax.random.normal(ks[11], (R, C2), jnp.float32),
        "fc2_w": 0.3 * jax.random.normal(ks[12], (C2, R), jnp.float32),
    }

    out = simfusion(x, params)
    out = jax.block_until_ready(out)

    ref = _reference(x, params)
    assert out.shape == (N, C2, H, W)
    assert jnp.allclose(out, ref, atol=2e-3, rtol=2e-3), "mismatch vs reference"

    print("KERNEL_OK")
</pallas_src>

<mosaic_0001>
module attributes {stable_mosaic.version = 11 : i64} {
  func.func @_simfusion_kernel(%arg0: i32, %arg1: memref<1x4x256xf32, #tpu.memory_space<vmem>>, %arg2: memref<8x4xf32, #tpu.memory_space<vmem>>, %arg3: memref<8x1xf32, #tpu.memory_space<vmem>>, %arg4: memref<8x72xf32, #tpu.memory_space<vmem>>, %arg5: memref<8x1xf32, #tpu.memory_space<vmem>>, %arg6: memref<72x256xf32, #tpu.memory_space<vmem>>, %arg7: memref<8x8xf32, #tpu.memory_space<vmem>>, %arg8: memref<8x8xf32, #tpu.memory_space<vmem>>, %arg9: memref<1x8x256xf32, #tpu.memory_space<vmem>>) attributes {dimension_semantics = [#tpu.dimension_semantics<parallel>], iteration_bounds = array<i64: 2>, scalar_prefetch = 0 : i64, scratch_operands = 0 : i64, tpu.core_type = #tpu.core_type<tc>, window_params = [{transform_indices = @transform_0, window_bounds = array<i64: 1, 4, 256>}, {pipeline_mode = #tpu.pipeline_mode<synchronous>, transform_indices = @transform_1, window_bounds = array<i64: 8, 4>}, {pipeline_mode = #tpu.pipeline_mode<synchronous>, transform_indices = @transform_2, window_bounds = array<i64: 8, 1>}, {pipeline_mode = #tpu.pipeline_mode<synchronous>, transform_indices = @transform_3, window_bounds = array<i64: 8, 72>}, {pipeline_mode = #tpu.pipeline_mode<synchronous>, transform_indices = @transform_4, window_bounds = array<i64: 8, 1>}, {pipeline_mode = #tpu.pipeline_mode<synchronous>, transform_indices = @transform_5, window_bounds = array<i64: 72, 256>}, {pipeline_mode = #tpu.pipeline_mode<synchronous>, transform_indices = @transform_6, window_bounds = array<i64: 8, 8>}, {pipeline_mode = #tpu.pipeline_mode<synchronous>, transform_indices = @transform_7, window_bounds = array<i64: 8, 8>}, {transform_indices = @transform_8, window_bounds = array<i64: 1, 8, 256>}]} {
    %c0 = arith.constant 0 : index
    %c0_0 = arith.constant 0 : index
    %c0_1 = arith.constant 0 : index
    %0 = vector.load %arg1[%c0, %c0_0, %c0_1] : memref<1x4x256xf32, #tpu.memory_space<vmem>>, vector<1x4x256xf32>
    %1 = vector.shape_cast %0 : vector<1x4x256xf32> to vector<4x256xf32>
    %c0_2 = arith.constant 0 : index
    %c0_3 = arith.constant 0 : index
    %2 = vector.load %arg2[%c0_2, %c0_3] : memref<8x4xf32, #tpu.memory_space<vmem>>, vector<8x4xf32>
    %cst = arith.constant dense<0.000000e+00> : vector<8x256xf32>
    %3 = tpu.matmul %2, %1, %cst {dimension_numbers = #tpu.dot_dimension_numbers<[1], [0], [0], [1], [0, 0, 1, 1], [], []>, precision = #tpu.contract_precision<fp32>} : vector<8x4xf32>, vector<4x256xf32>, vector<8x256xf32> -> vector<8x256xf32>
    %c0_4 = arith.constant 0 : index
    %c0_5 = arith.constant 0 : index
    %4 = vector.load %arg3[%c0_4, %c0_5] : memref<8x1xf32, #tpu.memory_space<vmem>>, vector<8x1xf32>
    %5 = vector.broadcast %4 : vector<8x1xf32> to vector<8x256xf32>
    %6 = arith.addf %3, %5 : vector<8x256xf32>
    %7 = arith.negf %6 : vector<8x256xf32>
    %8 = math.exp %7 : vector<8x256xf32>
    %cst_6 = arith.constant 1.000000e+00 : f32
    %9 = vector.broadcast %cst_6 : f32 to vector<8x256xf32>
    %10 = arith.addf %9, %8 : vector<8x256xf32>
    %11 = arith.divf %9, %10 : vector<8x256xf32>
    %12 = arith.mulf %6, %11 : vector<8x256xf32>
    %c17_i32 = arith.constant 17 : i32
    %13 = tpu.dynamic_rotate %12 by %c17_i32 dim 1 : vector<8x256xf32>, i32 -> vector<8x256xf32>
    %c16_i32 = arith.constant 16 : i32
    %14 = tpu.dynamic_rotate %12 by %c16_i32 dim 1 : vector<8x256xf32>, i32 -> vector<8x256xf32>
    %c15_i32 = arith.constant 15 : i32
    %15 = tpu.dynamic_rotate %12 by %c15_i32 dim 1 : vector<8x256xf32>, i32 -> vector<8x256xf32>
    %c1_i32 = arith.constant 1 : i32
    %16 = tpu.dynamic_rotate %12 by %c1_i32 dim 1 : vector<8x256xf32>, i32 -> vector<8x256xf32>
    %c255_i32 = arith.constant 255 : i32
    %17 = tpu.dynamic_rotate %12 by %c255_i32 dim 1 : vector<8x256xf32>, i32 -> vector<8x256xf32>
    %c241_i32 = arith.constant 241 : i32
    %18 = tpu.dynamic_rotate %12 by %c241_i32 dim 1 : vector<8x256xf32>, i32 -> vector<8x256xf32>
    %c240_i32 = arith.constant 240 : i32
    %19 = tpu.dynamic_rotate %12 by %c240_i32 dim 1 : vector<8x256xf32>, i32 -> vector<8x256xf32>
    %c239_i32 = arith.constant 239 : i32
    %20 = tpu.dynamic_rotate %12 by %c239_i32 dim 1 : vector<8x256xf32>, i32 -> vector<8x256xf32>
    %21 = tpu.concatenate %13, %14, %15, %16, %12, %17, %18, %19, %20 in 0 : vector<8x256xf32>, vector<8x256xf32>, vector<8x256xf32>, vector<8x256xf32>, vector<8x256xf32>, vector<8x256xf32>, vector<8x256xf32>, vector<8x256xf32>, vector<8x256xf32> -> vector<72x256xf32>
    %c0_7 = arith.constant 0 : index
    %c0_8 = arith.constant 0 : index
    %22 = vector.load %arg6[%c0_7, %c0_8] : memref<72x256xf32, #tpu.memory_space<vmem>>, vector<72x256xf32>
    %23 = arith.mulf %21, %22 : vector<72x256xf32>
    %c0_9 = arith.constant 0 : index
    %c0_10 = arith.constant 0 : index
    %24 = vector.load %arg4[%c0_9, %c0_10] : memref<8x72xf32, #tpu.memory_space<vmem>>, vector<8x72xf32>
    %cst_11 = arith.constant dense<0.000000e+00> : vector<8x256xf32>
    %25 = tpu.matmul %24, %23, %cst_11 {dimension_numbers = #tpu.dot_dimension_numbers<[1], [0], [0], [1], [0, 0, 1, 1], [], []>, precision = #tpu.contract_precision<fp32>} : vector<8x72xf32>, vector<72x256xf32>, vector<8x256xf32> -> vector<8x256xf32>
    %c0_12 = arith.constant 0 : index
    %c0_13 = arith.constant 0 : index
    %26 = vector.load %arg5[%c0_12, %c0_13] : memref<8x1xf32, #tpu.memory_space<vmem>>, vector<8x1xf32>
    %27 = vector.broadcast %26 : vector<8x1xf32> to vector<8x256xf32>
    %28 = arith.addf %25, %27 : vector<8x256xf32>
    %29 = arith.negf %28 : vector<8x256xf32>
    %30 = math.exp %29 : vector<8x256xf32>
    %cst_14 = arith.constant 1.000000e+00 : f32
    %31 = vector.broadcast %cst_14 : f32 to vector<8x256xf32>
    %32 = arith.addf %31, %30 : vector<8x256xf32>
    %33 = arith.divf %31, %32 : vector<8x256xf32>
    %34 = arith.mulf %28, %33 : vector<8x256xf32>
    %cst_15 = arith.constant dense<0.000000e+00> : vector<8xf32>
    %35 = vector.multi_reduction <add>, %34, %cst_15 [1] : vector<8x256xf32> to vector<8xf32>
    %36 = vector.shape_cast %35 : vector<8xf32> to vector<8x1xf32>
    %cst_16 = arith.constant 2.560000e+02 : f32
    %37 = vector.broadcast %cst_16 : f32 to vector<8x1xf32>
    %38 = arith.divf %36, %37 : vector<8x1xf32>
    %c0_17 = arith.constant 0 : index
    %c0_18 = arith.constant 0 : index
    %39 = vector.load %arg7[%c0_17, %c0_18] : memref<8x8xf32, #tpu.memory_space<vmem>>, vector<8x8xf32>
    %40 = vector.broadcast %38 : vector<8x1xf32> to vector<8x8xf32>
    %41 = arith.mulf %39, %40 : vector<8x8xf32>
    %cst_19 = arith.constant dense<0.000000e+00> : vector<8xf32>
    %42 = vector.multi_reduction <add>, %41, %cst_19 [0] : vector<8x8xf32> to vector<8xf32>
    %43 = vector.shape_cast %42 : vector<8xf32> to vector<1x8xf32>
    %44 = arith.negf %43 : vector<1x8xf32>
    %45 = math.exp %44 : vector<1x8xf32>
    %cst_20 = arith.constant 1.000000e+00 : f32
    %46 = vector.broadcast %cst_20 : f32 to vector<1x8xf32>
    %47 = arith.addf %46, %45 : vector<1x8xf32>
    %48 = arith.divf %46, %47 : vector<1x8xf32>
    %49 = arith.mulf %43, %48 : vector<1x8xf32>
    %c0_21 = arith.constant 0 : index
    %c0_22 = arith.constant 0 : index
    %50 = vector.load %arg8[%c0_21, %c0_22] : memref<8x8xf32, #tpu.memory_space<vmem>>, vector<8x8xf32>
    %51 = vector.broadcast %49 : vector<1x8xf32> to vector<8x8xf32>
    %52 = arith.mulf %50, %51 : vector<8x8xf32>
    %cst_23 = arith.constant dense<0.000000e+00> : vector<8xf32>
    %53 = vector.multi_reduction <add>, %52, %cst_23 [1] : vector<8x8xf32> to vector<8xf32>
    %54 = vector.shape_cast %53 : vector<8xf32> to vector<8x1xf32>
    %55 = arith.negf %54 : vector<8x1xf32>
    %56 = math.exp %55 : vector<8x1xf32>
    %cst_24 = arith.constant 1.000000e+00 : f32
    %57 = vector.broadcast %cst_24 : f32 to vector<8x1xf32>
    %58 = arith.addf %57, %56 : vector<8x1xf32>
    %59 = arith.divf %57, %58 : vector<8x1xf32>
    %60 = vector.broadcast %59 : vector<8x1xf32> to vector<8x256xf32>
    %61 = arith.mulf %34, %60 : vector<8x256xf32>
    %c0_25 = arith.constant 0 : index
    %c0_26 = arith.constant 0 : index
    %c0_27 = arith.constant 0 : index
    %62 = vector.load %arg9[%c0_25, %c0_26, %c0_27] : memref<1x8x256xf32, #tpu.memory_space<vmem>>, vector<1x8x256xf32>
    %63 = vector.shape_cast %62 : vector<1x8x256xf32> to vector<8x256xf32>
    %64 = vector.shape_cast %61 : vector<8x256xf32> to vector<1x8x256xf32>
    tpu.vector_store %arg9[%c0_25, %c0_26, %c0_27], %64 {strides = array<i32>} : memref<1x8x256xf32, #tpu.memory_space<vmem>>, vector<1x8x256xf32>,
    return
  }
  func.func @transform_0(%arg0: i32) -> (i32, i32, i32) {
    %c0_i32 = arith.constant 0 : i32
    %c0_i32_0 = arith.constant 0 : i32
    %c0_i32_1 = arith.constant 0 : i32
    return %arg0, %c0_i32, %c0_i32_0 : i32, i32, i32
  }
  func.func @transform_1(%arg0: i32) -> (i32, i32) {
    %c0_i32 = arith.constant 0 : i32
    %c0_i32_0 = arith.constant 0 : i32
    %c0_i32_1 = arith.constant 0 : i32
    return %c0_i32, %c0_i32_0 : i32, i32
  }
  func.func @transform_2(%arg0: i32) -> (i32, i32) {
    %c0_i32 = arith.constant 0 : i32
    %c0_i32_0 = arith.constant 0 : i32
    %c0_i32_1 = arith.constant 0 : i32
    return %c0_i32, %c0_i32_0 : i32, i32
  }
  func.func @transform_3(%arg0: i32) -> (i32, i32) {
    %c0_i32 = arith.constant 0 : i32
    %c0_i32_0 = arith.constant 0 : i32
    %c0_i32_1 = arith.constant 0 : i32
    return %c0_i32, %c0_i32_0 : i32, i32
  }
  func.func @transform_4(%arg0: i32) -> (i32, i32) {
    %c0_i32 = arith.constant 0 : i32
    %c0_i32_0 = arith.constant 0 : i32
    %c0_i32_1 = arith.constant 0 : i32
    return %c0_i32, %c0_i32_0 : i32, i32
  }
  func.func @transform_5(%arg0: i32) -> (i32, i32) {
    %c0_i32 = arith.constant 0 : i32
    %c0_i32_0 = arith.constant 0 : i32
    %c0_i32_1 = arith.constant 0 : i32
    return %c0_i32, %c0_i32_0 : i32, i32
  }
  func.func @transform_6(%arg0: i32) -> (i32, i32) {
    %c0_i32 = arith.constant 0 : i32
    %c0_i32_0 = arith.constant 0 : i32
    %c0_i32_1 = arith.constant 0 : i32
    return %c0_i32, %c0_i32_0 : i32, i32
  }
  func.func @transform_7(%arg0: i32) -> (i32, i32) {
    %c0_i32 = arith.constant 0 : i32
    %c0_i32_0 = arith.constant 0 : i32
    %c0_i32_1 = arith.constant 0 : i32
    return %c0_i32, %c0_i32_0 : i32, i32
  }
  func.func @transform_8(%arg0: i32) -> (i32, i32, i32) {
    %c0_i32 = arith.constant 0 : i32
    %c0_i32_0 = arith.constant 0 : i32
    %c0_i32_1 = arith.constant 0 : i32
    return %arg0, %c0_i32, %c0_i32_0 : i32, i32, i32
  }
}

</mosaic_0001>

<bundles_post_ra>
// kernel: tpu_custom_call.1
= control target key start
LH: loop header
LB: loop body
LE: loop exit
PB: predicated region body
PF: predicated region fallthrough
CT: control target
= control target key end

     0   :  { %13 = vsyncpa [#allocation3], 0  ;;  %s2563_s0 = inlined_call_operand.vmem [shape: f32[2,4,256], index: 0, kind: input, shape index: {}]   ;;  %s2564_s1 = inlined_call_operand.vmem [shape: f32[8,4], index: 1, kind: input, shape index: {}]   ;;  %s2565_s2 = inlined_call_operand.vmem [shape: f32[8,1], index: 2, kind: input, shape index: {}]   ;;  %s2566_s3 = inlined_call_operand.vmem [shape: f32[8,72], index: 3, kind: input, shape index: {}]   ;;  %s2567_s4 = inlined_call_operand.vmem [shape: f32[8,1], index: 4, kind: input, shape index: {}]   ;;  %s2568_s5 = inlined_call_operand.hbm [shape: f32[72,256], index: 5, kind: input, shape index: {}]   ;;  %s2569_s6 = inlined_call_operand.vmem [shape: f32[8,8], index: 6, kind: input, shape index: {}]   ;;  %s2570_s7 = inlined_call_operand.vmem [shape: f32[8,8], index: 7, kind: input, shape index: {}]   ;;  %s2571_s8 = inlined_call_operand.hbm [shape: f32[2,8,256], index: 8, kind: output, shape index: {}]  }
   0x1   :  { %14 = vsyncpa [#allocation4], 0 }
   0x2   :  { %16 = vsyncpa [#allocation4 + $0x1], 0  ;;  %s2118_s27 = smov 0   ;;  %s2120_s28 = smov 0  }
   0x3   :  { %s2122_s29 = smov 0   ;;  %s2124_s30 = smov 0  }
   0x4 LB: > { %s2139_s9 = sadd.s32 4294967295, %s2057_s30   ;;  %s1732_s10 = sadd.s32 4294967294, %s2057_s30   ;;  %s2057_s30 = sphi %s2124_s30, %s2593_s30   ;;  %s2053_s29 = sphi %s2122_s29, %s2592_s29   ;;  %s2049_s28 = sphi %s2120_s28, %s2591_s28   ;;  %s2045_s27 = sphi %s2118_s27, %s2590_s27  }
   0x5   : > { %s2143_s11 = sadd.s32 1, %s2057_s30   ;;  %s202_s12 = sadd.s32 1, %s2053_s29 }
   0x6   : > { %s199_s13 = ssub.s32 %s2057_s30, %s2143_s11  ;;  %p212_p0 = scmp.ne.s32.totalorder %s2053_s29, %s2049_s28 }
   0x7   : > { %p200_p1 = scmp.eq.s32.totalorder %s199_s13, 0  ;;  %p213_p2 = scmp.eq.s32.totalorder %s2139_s9, 1 }
   0x8   : > { %p218_p3 = scmp.ne.s32.totalorder %s2049_s28, %s2045_s27  ;;  %p219_p4 = scmp.eq.s32.totalorder %s1732_s10, 1 }
   0x9   : > { %s2154_s14 = scalar_select %p200_p1, %s2053_s29, %s202_s12  }
   0xa   : > { %p2156_p5 = por %p213_p2, %p212_p0  ;;  %p2160_p6 = por %p219_p4, %p218_p3 }
   0xb   : > { %p1733_p7 = scmp.ge.s32.totalorder %s2057_s30, 1  ;;  %p226_p8 = scmp.lt.s32.totalorder %s2057_s30, 3 }
   0xc   : > { %s2578_s15 = scalar_select %p2156_p5, 1, 0 }
   0xd   : > { %s2579_s16 = scalar_select %p2160_p6, 1, 0 }
   0xe   : > { %p2572_p9 = scmp.eq.s32.totalorder %s2139_s9, 0  ;;  %p2167_p10 = pnand %p1733_p7, %p226_p8 }
   0xf   : > { %s2059_s18 = smov [#allocation2]   ;;  %s1963_s23 = scalar_lea.hbm %s2568_s5, 2304 }
  0x10   : > { %s2580_s17 = scalar_select %p2167_p10, 1, 0 }
  0x11   : > { %s250_s19 = sshll.u32 %s2059_s18, 4  ;;  %p1880_p11 = pneg %p2167_p10  ;;  %s251_s19 = int_to_ptr.vmem [resolvable:$true] %s250_s19 }
  0x12   : > { %p1964_p13 = scmp.ne.s32.totalorder %s2568_s5, %s1963_s23  ;;  %p1970_p3 = scmp.lt.u32.totalorder %s1963_s23, %s2568_s5 }
  0x13   : > { %p2175_p12 = pnand %p2572_p9, %p1880_p11 }
  0x15   : > { %p1965_p0 = pneg %p2175_p12 }
  0x17   : > { %p1966_p1 = pnand %p1965_p0, %p1964_p13 }
  0x19   : > { %p1967_p2 = pneg %p1966_p1 }
  0x1b   : > { %p1972_p4 = pnand %p1970_p3, %p1967_p2 }
  0x1d   : > { %1975 = shalt.err (!%p1972_p4)
}
  0x1e   : > { %s1976_s12 = scalar_lea.vmem %s251_s19, 2304  ;;  %p1984_p9 = scmp.lt.s32.totalorder %s251_s19, %s251_s19 }
  0x1f   : > { %p1977_p7 = scmp.ne.s32.totalorder %s251_s19, %s1976_s12  ;;  %p1985_p6 = scmp.lt.s32.totalorder %s1976_s12, %s1976_s12 }
  0x21   : > { %p1979_p8 = pnand %p1977_p7, %p1965_p0  ;;  %p1986_p5 = por %p1985_p6, %p1984_p9 }
  0x23   : > { %p1980_p11 = pneg %p1979_p8 }
  0x25   : > { %p1987_p10 = pnand %p1986_p5, %p1980_p11 }
  0x27   : > { %1990 = shalt.err (!%p1987_p10)
}
  0x28   : > { %s2060_s13 = smov 256   ;;  %s2061_s18 = smov 16  }
  0x29   : > { %1883 = dma.hbm_to_vmem [thread:$0]  (!%p2175_p12), %s2568_s5, 2304, %s251_s19, [#allocation3], %s2060_s13, %s2060_s13, %s2061_s18  }
  0x2a   : > { %p2582_p13 = scmp.ne.s32.totalorder %s2580_s17, 0 }
  0x2b   : > { %p2583_p1 = scmp.eq.s32.totalorder (!%p2582_p13), %s2139_s9, 0 }
  0x2c   : > { %280 = sbr.rel (%p2582_p13) target bundleno = 1177 (0x499), region = 52 }
  0x33   : > { %2036 = dma.done.wait (%p2583_p1), [#allocation3], 2304   ;;  %p2584_p0 = pmov %p2583_p1 }
  0x34   : > { %p314_p5 = scmp.lt.s32.totalorder %s2139_s9, 1  ;;  %v2062_v0 = vmov 0.0   ;;  %v2063_v1 = vmov 0   ;;  %vm333_vm0 = vcmask 1043456   ;;  %vm329_vm1 = vcmask 31744   ;;  %v320_v3 = vld [vmem:[%s2564_s1] sm:$0xff] }
  0x35   : > { %2038 = vsyncadd (%p2584_p0), [#allocation3], 4294964992  ;;  %404 = vmatprep.mubr.f32.mxu0 %v2062_v0  ;;  %1278 = vmatprep.mubr.f32.mxu1 %v2062_v0  ;;  %v321_v4 = vld [vmem:[%s2565_s2] sm:$0xff]  ;;  %v331_v7 = vsel %vm329_vm1, %v320_v3, 0  ;;  %s2064_s13 = smov 16   ;;  %s2065_s18 = smov 17   ;;  %v821_v40 = vlaneseq }
  0x36   : > { %s315_s20 = scalar_select %p314_p5, %s2139_s9, 1  ;;  %1936 = vset.pattern.permute.xlu0 %v2063_v1  ;;  %1937 = vset.pattern.permute.xlu1 %v2063_v1  ;;  %v405_v9 = vand.u32 4294901760, %v331_v7  ;;  %v912_v39 = vld [vmem:[%s2567_s4] sm:$0xff]  ;;  %v884_v45 = vld [vmem:[#allocation2 + $0x48] sm:$0xff]  ;;  %vm918_vm3 = vcmask 588800   ;;  %v877_v51 = vld [vmem:[#allocation2 + $0x10] sm:$0xff] }
  0x37   : > { %324 = vperm.xlu0 %1936, %v321_v4   ;;  %s2066_s21 = smov 15   ;;  %s2067_s22 = smov 1   ;;  %v2223_v41 = vand.u32 127, %v821_v40  ;;  %v883_v42 = vld [vmem:[#allocation2 + $0x40] sm:$0xff]  ;;  %v878_v55 = vld [vmem:[#allocation2 + $0x18] sm:$0xff]  ;;  %v880_v59 = vld [vmem:[#allocation2 + $0x28] sm:$0xff] }
  0x38   : > { %s1752_s17 = sshll.u32 %s315_s20, 3  ;;  %v406_v13 = vsub.f32 %v331_v7, %v405_v9  ;;  %s2068_s20 = smov 127   ;;  %v911_v47 = vld [vmem:[%s2566_s3] sm:$0xff]  ;;  %vm1616_vm11 = vcmask 64512  }
  0x39   : > { %s318_s24 = scalar_lea.vmem %s2563_s0, %s1752_s17  ;;  %s2069_s17 = smov 113   ;;  %vm830_vm2 = vcmp.lt.s32.totalorder %v2223_v41, 16  ;;  %v920_v53 = vsel %vm918_vm3, %v911_v47, 0  ;;  %vm837_vm4 = vcmp.lt.s32.totalorder %v2223_v41, 15  ;;  %vm823_vm5 = vcmp.lt.s32.totalorder %v2223_v41, 17  ;;  %v879_v3 = vld [vmem:[#allocation2 + $0x20] sm:$0xff] }
  0x3a   : > { %v319_v2 = vld [vmem:[%s318_s24] sm:$0xff]  ;;  %v407_v14 = vand.u32 4294901760, %v406_v13  ;;  %s2070_s19 = smov 112   ;;  %s2071_s23 = smov 111   ;;  %v2236_v62 = vand.u32 4294901760, %v920_v53  ;;  %vm844_vm6 = vcmp.lt.s32.totalorder %v2223_v41, 1 }
  0x3b   : > { %v328_v5 = vcombine.high %v319_v2, %v319_v2  ;;  %v334_v6 = vsel %vm333_vm0, %v319_v2, 0  ;;  %vm851_vm7 = vcmp.lt.s32.totalorder %v2223_v41, 127  ;;  %vm858_vm8 = vcmp.lt.s32.totalorder %v2223_v41, 113  ;;  %p2588_p9 = scmp.ne.s32.totalorder %s2578_s15, 0 }
  0x3c   : > { %v340_v8 = vand.u32 4294901760, %v334_v6  ;;  %v408_v17 = vsub.f32 %v406_v13, %v407_v14  ;;  %vm865_vm9 = vcmp.lt.s32.totalorder %v2223_v41, 112  ;;  %vm872_vm10 = vcmp.lt.s32.totalorder %v2223_v41, 111 }
  0x3d   : > { %v336_v10 = vsel %vm333_vm0, %v328_v5, 0 }
  0x3e   : > { %v338_v11 = vand.u32 4294901760, %v336_v10  ;;  %v423_v12 = vsub.f32 %v334_v6, %v340_v8  ;;  %v409_v20 = vand.u32 4294901760, %v408_v17  ;;  %v875_v6 = vld [vmem:[#allocation2] sm:$0xff] }
  0x40   : > { %339 = vmatprep.subr.mxu0 %v338_v11  ;;  %v417_v15 = vsub.f32 %v336_v10, %v338_v11  ;;  %v424_v16 = vand.u32 4294901760, %v423_v12  ;;  %v881_v10 = vld [vmem:[#allocation2 + $0x30] sm:$0xff] }
  0x41   : > { %341 = vmatpush1.msra.mxu0 %v340_v8 }
  0x42   : > { %v418_v18 = vand.u32 4294901760, %v417_v15  ;;  %v425_v19 = vsub.f32 %v423_v12, %v424_v16  ;;  %410 = vmatmul.mubr.f32.vlgmr.msra.gmra.mrb[0].mxu0 %v409_v20 }
  0x43   : > { %490 = vmatprep.mubr.f32.mxu0 %v2062_v0 }
  0x44   : > { %v419_v21 = vsub.f32 %v417_v15, %v418_v18  ;;  %v426_v22 = vand.u32 4294901760, %v425_v19 }
  0x46   : > { %v420_v23 = vand.u32 4294901760, %v419_v21 }
  0x48   : > { %421 = vmatprep.subr.mxu0 %v420_v23 }
  0x49   : > { %427 = vmatpush1.msra.mxu0 %v426_v22 }
  0x4a   : > { %500 = vmatprep.subr.mxu0 %v417_v15  ;;  %492 = vmatmul.mubr.f32.vlgmr.msra.gmra.mrb[0].mxu0 %v405_v9 }
  0x4b   : > { %503 = vmatpush1.msra.mxu0 %v423_v12  ;;  %566 = vmatprep.mubr.f32.mxu0 %v2062_v0 }
  0x4c   : > { %576 = vmatprep.subr.mxu0 %v338_v11 }
  0x52   : > { %569 = vmatmul.mubr.f32.vlgmr.msra.gmra.mrb[0].mxu0 %v406_v13 }
  0x53   : > { %578 = vmatpush1.msra.mxu0 %v340_v8  ;;  %641 = vmatprep.mubr.f32.mxu0 %v2062_v0 }
  0x54   : > { %654 = vmatprep.subr.mxu0 %v418_v18 }
  0x5a   : > { %645 = vmatmul.mubr.f32.vlgmr.msra.gmra.mrb[0].mxu0 %v407_v14  ;;  %v2256_v14 = vsub.f32 %v920_v53, %v2236_v62 }
  0x5b   : > { %658 = vmatpush1.msra.mxu0 %v424_v16  ;;  %721 = vmatprep.mubr.f32.mxu0 %v2062_v0 }
  0x5c   : > { %730 = vmatprep.subr.mxu0 %v338_v11  ;;  %v882_v11 = vld [vmem:[#allocation2 + $0x38] sm:$0xff] }
  0x62   : > { %723 = vmatmul.mubr.f32.vlgmr.msra.gmra.mrb[0].mxu0 %v405_v9 }
  0x63   : > { %732 = vmatpush1.msra.mxu0 %v340_v8  ;;  %795 = vmatprep.mubr.f32.mxu0 %v2062_v0  ;;  %v876_v8 = vld [vmem:[#allocation2 + $0x8] sm:$0xff] }
  0x6a   : > { %797 = vmatmul.mubr.f32.vlgmr.msra.gmra.mrb[0].mxu0 %v405_v9 }
  0x6b   : > { %1004 = vmatprep.mubr.f32.mxu0 %v2062_v0 }
  0xb6   : > { %v325_v24 = vpop.permute.xlu0 %324 }
 0x13d   : > { %v798_v25 = vpop.f32.mrb[0].mxu0 }
 0x13e   : > { %v1850_v26 = vadd.f32 %v798_v25, %v325_v24  ;;  %v800_v27 = vpop.f32.mrb[1].mxu0 }
 0x13f   : > { %v1851_v28 = vadd.f32 %v800_v27, %v325_v24 }
 0x140   : > { %v1741_v29 = vmul.f32 -1.442695, %v1850_v26 }
 0x141   : > { %v1742_v30 = vmul.f32 -1.442695, %v1851_v28 }
 0x142   : > { %1939 = vpow2.f32 %v1741_v29 }
 0x143   : > { %1941 = vpow2.f32 %v1742_v30 }
 0x14c   : > { %v1940_v31 = vpop.eup %1939 }
 0x14d   : > { %v1942_v32 = vpop.eup %1941  ;;  %v809_v33 = vadd.f32 1.0, %v1940_v31 }
 0x14e   : > { %v810_v34 = vadd.f32 1.0, %v1942_v32 }
 0x14f   : > { %1943 = vrcp.f32 %v809_v33  ;;  %v885_v33 = vld [vmem:[#allocation2 + $0x50] sm:$0xff] }
 0x150   : > { %1945 = vrcp.f32 %v810_v34  ;;  %v886_v34 = vld [vmem:[#allocation2 + $0x58] sm:$0xff] }
 0x159   : > { %v1944_v35 = vpop.eup %1943 }
 0x15a   : > { %v815_v36 = vmul.f32 %v1944_v35, %v1850_v26  ;;  %v1946_v37 = vpop.eup %1945 }
 0x15b   : > { %v816_v38 = vmul.f32 %v1946_v37, %v1851_v28 }
 0x15c   : > { %826 = vrot.lane.b32.xlu1 %v815_v36, %s2064_s13  ;;  %817 = vrot.lane.b32.xlu0 %v815_v36, %s2065_s18  ;;  %v2226_v46 = vmul.f32 %v883_v42, %v815_v36 }
 0x15d   : > { %v2231_v50 = vmul.f32 %v884_v45, %v816_v38  ;;  %v888_v45 = vld [vmem:[#allocation2 + $0x68] sm:$0xff] }
 0x15e   : > { %v940_v54 = vand.u32 4294901760, %v2226_v46 }
 0x15f   : > { %v938_v61 = vand.u32 4294901760, %v2231_v50 }
 0x160   : > { %833 = vrot.lane.b32.xlu1 %v815_v36, %s2066_s21  ;;  %828 = vrot.lane.b32.xlu0 %v816_v38, %s2064_s13  ;;  %v2245_v2 = vsub.f32 %v2226_v46, %v940_v54 }
 0x161   : > { %v2253_v13 = vsub.f32 %v2231_v50, %v938_v61 }
 0x162   : > { %v1072_v22 = vand.u32 4294901760, %v2245_v2 }
 0x163   : > { %v2577_v30 = vand.u32 4294901760, %v2253_v13 }
 0x164   : > { %840 = vrot.lane.b32.xlu1 %v815_v36, %s2067_s22  ;;  %835 = vrot.lane.b32.xlu0 %v816_v38, %s2066_s21 }
 0x168   : > { %819 = vrot.lane.b32.xlu1 %v816_v38, %s2065_s18  ;;  %842 = vrot.lane.b32.xlu0 %v816_v38, %s2067_s22  ;;  %s311_s22 = sand.u32 1, %s2049_s28  }
 0x169   : > { %s1647_s10 = scalar_lea.sflag [#allocation4], %s311_s22 }
 0x16c   : > { %847 = vrot.lane.b32.xlu1 %v815_v36, %s2068_s20  ;;  %849 = vrot.lane.b32.xlu0 %v816_v38, %s2068_s20  ;;  %s1738_s20 = sshll.u32 %s311_s22, 4 }
 0x170   : > { %854 = vrot.lane.b32.xlu1 %v815_v36, %s2069_s17  ;;  %856 = vrot.lane.b32.xlu0 %v816_v38, %s2069_s17  ;;  %s1753_s17 = sshll.u32 %s2139_s9, 8  ;;  %s2072_s9 = smov [#allocation5]  }
 0x171   : > { %s2521_s26 = scalar_lea.hbm %s2571_s8, %s1753_s17  ;;  %s1995_s13 = sshll.u32 %s2072_s9, 4  ;;  %s1996_s13 = int_to_ptr.vmem [resolvable:$false] %s1995_s13 }
 0x172   : > { %s1997_s18 = scalar_lea.vmem %s1996_s13, 512 }
 0x174   : > { %861 = vrot.lane.b32.xlu1 %v815_v36, %s2070_s19  ;;  %863 = vrot.lane.b32.xlu0 %v816_v38, %s2070_s19  ;;  %s313_s19 = scalar_lea.vmem [#allocation5], %s1738_s20 }
 0x178   : > { %868 = vrot.lane.b32.xlu1 %v815_v36, %s2071_s23  ;;  %870 = vrot.lane.b32.xlu0 %v816_v38, %s2071_s23  ;;  %v1007_v36 = vand.u32 4294901760, %v2256_v14  ;;  %s1661_s23 = sshll.u32 %s313_s19, 4  ;;  %s2523_s23 = int_to_ptr.vmem [resolvable:$true] %s1661_s23 }
 0x179   : > { %s1991_s12 = scalar_lea.vmem %s2523_s23, 256  ;;  %p1998_p2 = scmp.lt.s32.totalorder %s2523_s23, %s1996_s13 }
 0x17a   : > { %p1992_p6 = scmp.ne.s32.totalorder %s2523_s23, %s1991_s12  ;;  %p1999_p3 = scmp.lt.s32.totalorder %s1997_s18, %s1991_s12 }
 0x17c   : > { %915 = vperm.xlu1 %1937, %v912_v39   ;;  %p1993_p10 = pnand %p1992_p6, %p2588_p9  ;;  %p2000_p4 = por %p1999_p3, %p1998_p2 }
 0x17e   : > { %p1994_p12 = pneg %p1993_p10 }
 0x180   : > { %p2001_p7 = pnand %p2000_p4, %p1994_p12 }
 0x1ce   : > { %v827_v43 = vpop.permute.xlu1 %826  ;;  %v818_v44 = vpop.permute.xlu0 %817 }
 0x1d2   : > { %v834_v48 = vpop.permute.xlu1 %833  ;;  %v829_v49 = vpop.permute.xlu0 %828 }
 0x1d3   : > { %v832_v52 = vsel %vm830_vm2, %v829_v49, %v827_v43  ;;  %v831_v56 = vsel %vm830_vm2, %v827_v43, %v829_v49 }
 0x1d4   : > { %v895_v57 = vmul.f32 %v877_v51, %v832_v52  ;;  %v896_v1 = vmul.f32 %v878_v55, %v831_v56  ;;  %v887_v56 = vld [vmem:[#allocation2 + $0x60] sm:$0xff] }
 0x1d6   : > { %v841_v58 = vpop.permute.xlu1 %840  ;;  %v836_v60 = vpop.permute.xlu0 %835  ;;  %v928_v7 = vand.u32 4294901760, %v895_v57  ;;  %v926_v19 = vand.u32 4294901760, %v896_v1 }
 0x1d7   : > { %v838_v63 = vsel %vm837_vm4, %v834_v48, %v836_v60  ;;  %v839_v4 = vsel %vm837_vm4, %v836_v60, %v834_v48 }
 0x1d8   : > { %v898_v5 = vmul.f32 %v880_v59, %v838_v63  ;;  %v897_v20 = vmul.f32 %v879_v3, %v839_v4  ;;  %v2270_v31 = vsub.f32 %v895_v57, %v928_v7  ;;  %v2277_v39 = vsub.f32 %v896_v1, %v926_v19 }
 0x1d9   : > { %v2296_v59 = vsub.f32 %v2256_v14, %v1007_v36 }
 0x1da   : > { %v820_v9 = vpop.permute.xlu1 %819  ;;  %v843_v12 = vpop.permute.xlu0 %842  ;;  %v930_v23 = vand.u32 4294901760, %v898_v5  ;;  %v932_v40 = vand.u32 4294901760, %v897_v20  ;;  %v1036_v55 = vand.u32 4294901760, %v2270_v31  ;;  %v1030_v3 = vand.u32 4294901760, %v2277_v39 }
 0x1db   : > { %v824_v15 = vsel %vm823_vm5, %v818_v44, %v820_v9  ;;  %v825_v16 = vsel %vm823_vm5, %v820_v9, %v818_v44  ;;  %v845_v17 = vsel %vm844_vm6, %v841_v58, %v843_v12  ;;  %v846_v18 = vsel %vm844_vm6, %v843_v12, %v841_v58 }
 0x1dc   : > { %v893_v21 = vmul.f32 %v875_v6, %v825_v16  ;;  %v894_v24 = vmul.f32 %v876_v8, %v824_v15  ;;  %v899_v25 = vmul.f32 %v881_v10, %v846_v18  ;;  %v900_v26 = vmul.f32 %v882_v11, %v845_v17  ;;  %v890_v16 = vld [vmem:[#allocation2 + $0x78] sm:$0xff] }
 0x1dd   : > { %v2280_v42 = vsub.f32 %v898_v5, %v930_v23  ;;  %v2302_v4 = vsub.f32 %v897_v20, %v932_v40 }
 0x1de   : > { %v924_v27 = vand.u32 4294901760, %v893_v21  ;;  %v848_v28 = vpop.permute.xlu1 %847  ;;  %v850_v29 = vpop.permute.xlu0 %849  ;;  %v922_v32 = vand.u32 4294901760, %v894_v24  ;;  %v934_v37 = vand.u32 4294901760, %v900_v26  ;;  %v936_v44 = vand.u32 4294901760, %v899_v25 }
 0x1df   : > { %v852_v35 = vsel %vm851_vm7, %v848_v28, %v850_v29  ;;  %v853_v38 = vsel %vm851_vm7, %v850_v29, %v848_v28  ;;  %v1042_v8 = vand.u32 4294901760, %v2280_v42 }
 0x1e0   : > { %v2282_v43 = vpack.c.bf16 %v928_v7, %v924_v27  ;;  %v2284_v47 = vsub.f32 %v893_v21, %v924_v27  ;;  %v903_v48 = vmul.f32 %v885_v33, %v852_v35  ;;  %v904_v49 = vmul.f32 %v886_v34, %v853_v38  ;;  %v889_v7 = vld [vmem:[#allocation2 + $0x70] sm:$0xff] }
 0x1e1   : > { %v2286_v52 = vpack.c.bf16 %v926_v19, %v922_v32  ;;  %v2299_v1 = vpack.c.bf16 %v934_v37, %v930_v23  ;;  %v2304_v5 = vsub.f32 %v900_v26, %v934_v37  ;;  %v2307_v6 = vsub.f32 %v894_v24, %v922_v32 }
 0x1e2   : > { %v855_v51 = vpop.permute.xlu1 %854  ;;  %v857_v53 = vpop.permute.xlu0 %856  ;;  %v942_v60 = vand.u32 4294901760, %v904_v49  ;;  %v2310_v9 = vsub.f32 %v899_v25, %v936_v44  ;;  %v944_v10 = vand.u32 4294901760, %v903_v48  ;;  %v1788_v12 = vpack.c.bf16 %v2270_v31, %v2284_v47 }
 0x1e3   : > { %v859_v57 = vsel %vm858_vm8, %v855_v51, %v857_v53  ;;  %v860_v58 = vsel %vm858_vm8, %v857_v53, %v855_v51  ;;  %1755 = vmatprep.subr.bf16.mxu0 %v2286_v52  ;;  %v2315_v18 = vpack.c.bf16 %v936_v44, %v932_v40  ;;  %v1786_v20 = vpack.c.bf16 %v2277_v39, %v2307_v6  ;;  %v892_v40 = vld [vmem:[#allocation2 + $0x88] sm:$0xff]  ;;  %v891_v53 = vld [vmem:[#allocation2 + $0x80] sm:$0xff] }
 0x1e4   : > { %v906_v63 = vmul.f32 %v888_v45, %v860_v58  ;;  %1757 = vmatpush1.bf16.msra.mxu0 %v2282_v43  ;;  %v905_v11 = vmul.f32 %v887_v56, %v859_v57  ;;  %v1024_v23 = vand.u32 4294901760, %v2284_v47  ;;  %v2322_v24 = vsub.f32 %v904_v49, %v942_v60 }
 0x1e5   : > { %1759 = vmatprep.subr.bf16.mxu0 %v2299_v1  ;;  %1787 = vmatprep.subr.bf16.mxu1 %v1786_v20  ;;  %v1790_v27 = vpack.c.bf16 %v2304_v5, %v2280_v42  ;;  %v2331_v29 = vpack.c.bf16 %v942_v60, %v938_v61  ;;  %v1018_v32 = vand.u32 4294901760, %v2307_v6  ;;  %v1060_v33 = vand.u32 4294901760, %v2310_v9 }
 0x1e6   : > { %v862_v15 = vpop.permute.xlu1 %861  ;;  %v864_v17 = vpop.permute.xlu0 %863  ;;  %v946_v19 = vand.u32 4294901760, %v906_v63  ;;  %v2337_v34 = vpack.c.bf16 %v944_v10, %v940_v54  ;;  %v948_v35 = vand.u32 4294901760, %v905_v11  ;;  %1789 = vmatpush1.bf16.msra.mxu1 %v1788_v12  ;;  %v2339_v45 = vsub.f32 %v903_v48, %v944_v10 }
 0x1e7   : > { %v866_v21 = vsel %vm865_vm9, %v862_v15, %v864_v17  ;;  %v867_v25 = vsel %vm865_vm9, %v864_v17, %v862_v15  ;;  %1791 = vmatprep.subr.bf16.mxu1 %v1790_v27  ;;  %v1792_v54 = vpack.c.bf16 %v2310_v9, %v2302_v4  ;;  %v1794_v51 = vpack.c.bf16 %v2322_v24, %v2253_v13 }
 0x1e8   : > { %v907_v26 = vmul.f32 %v889_v7, %v866_v21  ;;  %v908_v28 = vmul.f32 %v890_v16, %v867_v25  ;;  %1761 = vmatpush1.bf16.msra.mxu0 %v2315_v18  ;;  %v2341_v49 = vsub.f32 %v906_v63, %v946_v19  ;;  %v1019_v60 = vsub.f32 %v2307_v6, %v1018_v32 }
 0x1e9   : > { %1763 = vmatprep.subr.bf16.mxu0 %v2331_v29  ;;  %v1037_v63 = vsub.f32 %v2270_v31, %v1036_v55  ;;  %v1025_v41 = vsub.f32 %v2284_v47, %v1024_v23  ;;  %v1031_v10 = vsub.f32 %v2277_v39, %v1030_v3  ;;  %v1048_v12 = vand.u32 4294901760, %v2302_v4 }
 0x1ea   : > { %v952_v37 = vand.u32 4294901760, %v907_v26  ;;  %v869_v38 = vpop.permute.xlu1 %868  ;;  %v871_v44 = vpop.permute.xlu0 %870  ;;  %v950_v50 = vand.u32 4294901760, %v908_v28  ;;  %1793 = vmatpush1.bf16.msra.mxu1 %v1792_v54  ;;  %v1796_v20 = vpack.c.bf16 %v2339_v45, %v2245_v2  ;;  %v1020_v21 = vand.u32 4294901760, %v1019_v60 }
 0x1eb   : > { %v874_v61 = vsel %vm872_vm10, %v871_v44, %v869_v38  ;;  %v873_v48 = vsel %vm872_vm10, %v869_v38, %v871_v44  ;;  %1795 = vmatprep.subr.bf16.mxu1 %v1794_v51  ;;  %v1054_v25 = vand.u32 4294901760, %v2304_v5  ;;  %v2576_v27 = vand.u32 4294901760, %v2339_v45 }
 0x1ec   : > { %v2346_v46 = vpack.c.bf16 %v952_v37, %v948_v35  ;;  %v2354_v56 = vsub.f32 %v908_v28, %v950_v50  ;;  %v910_v57 = vmul.f32 %v892_v40, %v874_v61  ;;  %1765 = vmatpush1.bf16.msra.mxu0 %v2337_v34  ;;  %v2357_v58 = vpack.c.bf16 %v950_v50, %v946_v19 }
 0x1ed   : > { %v2368_v7 = vsub.f32 %v907_v26, %v952_v37  ;;  %v909_v15 = vmul.f32 %v891_v53, %v873_v48  ;;  %v2379_v19 = vsub.f32 %v905_v11, %v948_v35  ;;  %v1061_v26 = vsub.f32 %v2310_v9, %v1060_v33 }
 0x1ee   : > { %v2374_v16 = vand.u32 4294901760, %v910_v57  ;;  %1767 = vmatprep.subr.bf16.mxu0 %v2357_v58  ;;  %v1798_v17 = vpack.c.bf16 %v2354_v56, %v2341_v49  ;;  %v1009_v28 = vand.u32 4294901760, %v2296_v59  ;;  %v1043_v11 = vsub.f32 %v2280_v42, %v1042_v8  ;;  %1797 = vmatpush1.bf16.msra.mxu1 %v1796_v20 }
 0x1ef   : > { %v1800_v35 = vpack.c.bf16 %v2368_v7, %v2379_v19  ;;  %v1032_v37 = vand.u32 4294901760, %v1031_v10  ;;  %v1026_v38 = vand.u32 4294901760, %v1025_v41  ;;  %v1055_v40 = vsub.f32 %v2304_v5, %v1054_v25 }
 0x1f0   : > { %1769 = vmatpush1.bf16.msra.mxu0 %v2346_v46  ;;  %v2399_v44 = vand.u32 4294901760, %v909_v15  ;;  %1799 = vmatprep.subr.bf16.mxu1 %v1798_v17  ;;  %v2402_v59 = vsub.f32 %v910_v57, %v2374_v16  ;;  %v2575_v50 = vand.u32 4294901760, %v2322_v24  ;;  %v1102_v61 = vand.u32 4294901760, %v2354_v56 }
 0x1f1   : > { %955 = vmatprep.subr.mxu0 %v2374_v16  ;;  %v1049_v54 = vsub.f32 %v2302_v4, %v1048_v12  ;;  %v1770_v51 = vpack.c.bf16 %v1032_v37, %v1020_v21  ;;  %v1038_v53 = vand.u32 4294901760, %v1037_v63  ;;  %v1056_v48 = vand.u32 4294901760, %v1055_v40 }
 0x1f2   : > { %v1044_v60 = vand.u32 4294901760, %v1043_v11  ;;  %v1067_v41 = vsub.f32 %v2253_v13, %v2577_v30  ;;  %v1079_v57 = vsub.f32 %v2322_v24, %v2575_v50  ;;  %v1090_v10 = vand.u32 4294901760, %v2341_v49  ;;  %1801 = vmatpush1.bf16.msra.mxu1 %v1800_v35 }
 0x1f3   : > { %v1085_v17 = vsub.f32 %v2339_v45, %v2576_v27  ;;  %v1108_v63 = vand.u32 4294901760, %v2368_v7  ;;  %v1772_v20 = vpack.c.bf16 %v1038_v53, %v1026_v38  ;;  %v1062_v21 = vand.u32 4294901760, %v1061_v26  ;;  %1228 = vmatprep.subr.mxu1 %v2402_v59 }
 0x1f4   : > { %957 = vmatpush1.msra.mxu0 %v2399_v44  ;;  %v1774_v11 = vpack.c.bf16 %v1056_v48, %v1044_v60  ;;  %v1080_v37 = vand.u32 4294901760, %v1079_v57  ;;  %v1103_v40 = vsub.f32 %v2354_v56, %v1102_v61  ;;  %v1096_v50 = vand.u32 4294901760, %v2379_v19 }
 0x1f5   : > { %1771 = vmatprep.subr.bf16.mxu0 %v1770_v51  ;;  %1010 = vmatmul.mubr.f32.vlgmr.msra.gmra.mrb[2].mxu0 %v1009_v28  ;;  %v2427_v27 = vsub.f32 %v909_v15, %v2399_v44  ;;  %v1050_v30 = vand.u32 4294901760, %v1049_v54  ;;  %v1073_v26 = vsub.f32 %v2245_v2, %v1072_v22  ;;  %v1068_v28 = vand.u32 4294901760, %v1067_v41 }
 0x1f6   : > { %1773 = vmatpush1.bf16.msra.mxu0 %v1772_v20  ;;  %1170 = vmatprep.mubr.f32.mxu0 %v2062_v0  ;;  %v1091_v35 = vsub.f32 %v2341_v49, %v1090_v10  ;;  %v1109_v38 = vsub.f32 %v2368_v7, %v1108_v63  ;;  %v1086_v54 = vand.u32 4294901760, %v1085_v17  ;;  %v1104_v53 = vand.u32 4294901760, %v1103_v40 }
 0x1f7   : > { %1775 = vmatprep.subr.bf16.mxu0 %v1774_v11  ;;  %1231 = vmatpush1.msra.mxu1 %v2427_v27  ;;  %v1776_v15 = vpack.c.bf16 %v1062_v21, %v1050_v30  ;;  %v1778_v51 = vpack.c.bf16 %v1080_v37, %v1068_v28  ;;  %v1114_v48 = vand.u32 4294901760, %v2402_v59  ;;  %v1097_v60 = vsub.f32 %v2379_v19, %v1096_v50 }
 0x1f8   : > { %1803 = vmatprep.subr.bf16.mxu1 %v2286_v52  ;;  %1281 = vmatmul.mubr.f32.vlgmr.msra.gmra.mrb[0].mxu1 %v2256_v14  ;;  %v1074_v41 = vand.u32 4294901760, %v1073_v26  ;;  %v1092_v30 = vand.u32 4294901760, %v1091_v35  ;;  %v1120_v57 = vand.u32 4294901760, %v2427_v27  ;;  %v1110_v20 = vand.u32 4294901760, %v1109_v38 }
 0x1f9   : > { %1805 = vmatpush1.bf16.msra.mxu1 %v2282_v43  ;;  %1369 = vmatprep.mubr.f32.mxu1 %v2062_v0  ;;  %v1115_v11 = vsub.f32 %v2402_v59, %v1114_v48  ;;  %v1098_v37 = vand.u32 4294901760, %v1097_v60  ;;  %v1820_v59 = vpack.c.bf16 %v1036_v55, %v1024_v23  ;;  %v1822_v38 = vpack.c.bf16 %v1054_v25, %v1042_v8 }
 0x1fa   : > { %1777 = vmatpush1.bf16.msra.mxu0 %v1776_v15  ;;  %1807 = vmatprep.subr.bf16.mxu1 %v2299_v1  ;;  %v1780_v17 = vpack.c.bf16 %v1086_v54, %v1074_v41  ;;  %v1782_v21 = vpack.c.bf16 %v1104_v53, %v1092_v30  ;;  %v1121_v26 = vsub.f32 %v2427_v27, %v1120_v57  ;;  %v2585_v31 = vand.u32 4294901760, %v2253_v13  ;;  %v1631_v15 = vld [vmem:[%s2570_s7] sm:$0xff] }
 0x1fb   : > { %1779 = vmatprep.subr.bf16.mxu0 %v1778_v51  ;;  %v1784_v40 = vpack.c.bf16 %v1110_v20, %v1098_v37  ;;  %v1116_v28 = vand.u32 4294901760, %v1115_v11  ;;  %v1818_v27 = vpack.c.bf16 %v1030_v3, %v1018_v32  ;;  %v1824_v39 = vpack.c.bf16 %v1060_v33, %v1048_v12 }
 0x1fc   : > { %v1122_v35 = vand.u32 4294901760, %v1121_v26  ;;  %v2586_v47 = vand.u32 4294901760, %v2322_v24  ;;  %v1830_v55 = vpack.c.bf16 %v1102_v61, %v1090_v10  ;;  %v1832_v13 = vpack.c.bf16 %v1108_v63, %v1096_v50 }
 0x1fd   : > { %1809 = vmatpush1.bf16.msra.mxu1 %v2315_v18 }
 0x1fe   : > { %1781 = vmatpush1.bf16.msra.mxu0 %v1780_v17  ;;  %1811 = vmatprep.subr.bf16.mxu1 %v2331_v29  ;;  %v1826_v14 = vpack.c.bf16 %v2586_v47, %v2585_v31 }
 0x1ff   : > { %1783 = vmatprep.subr.bf16.mxu0 %v1782_v21 }
 0x201   : > { %1813 = vmatpush1.bf16.msra.mxu1 %v2337_v34 }
 0x202   : > { %1785 = vmatpush1.bf16.msra.mxu0 %v1784_v40  ;;  %1815 = vmatprep.subr.bf16.mxu1 %v2357_v58 }
 0x203   : > { %1117 = vmatprep.subr.mxu0 %v1116_v28 }
 0x205   : > { %1817 = vmatpush1.bf16.msra.mxu1 %v2346_v46 }
 0x206   : > { %1123 = vmatpush1.msra.mxu0 %v1122_v35  ;;  %1320 = vmatprep.subr.mxu1 %v2374_v16 }
 0x207   : > { %1172 = vmatmul.mubr.f32.vlgmr.msra.gmra.mrb[2].mxu0 %v2236_v62 }
 0x209   : > { %1322 = vmatpush1.msra.mxu1 %v2399_v44 }
 0x20a   : > { %1819 = vmatprep.subr.bf16.mxu1 %v1818_v27  ;;  %1373 = vmatmul.mubr.f32.vlgmr.msra.gmra.mrb[0].mxu1 %v1007_v36  ;;  %v2587_v36 = vand.u32 4294901760, %v2339_v45  ;;  %v1614_v45 = vld [vmem:[%s2569_s6] sm:$0xff] }
 0x20b   : > { %1821 = vmatpush1.bf16.msra.mxu1 %v1820_v59  ;;  %1497 = vmatprep.mubr.f32.mxu1 %v2062_v0 }
 0x20c   : > { %1823 = vmatprep.subr.bf16.mxu1 %v1822_v38  ;;  %v1828_v42 = vpack.c.bf16 %v2587_v36, %v1072_v22  ;;  %v916_v22 = vpop.permute.xlu1 %915 }
 0x20f   : > { %1825 = vmatpush1.bf16.msra.mxu1 %v1824_v39 }
 0x210   : > { %1827 = vmatprep.subr.bf16.mxu1 %v1826_v14 }
 0x213   : > { %1829 = vmatpush1.bf16.msra.mxu1 %v1828_v42 }
 0x214   : > { %1831 = vmatprep.subr.bf16.mxu1 %v1830_v55 }
 0x217   : > { %1833 = vmatpush1.bf16.msra.mxu1 %v1832_v13 }
 0x218   : > { %1446 = vmatprep.subr.mxu1 %v1114_v48 }
 0x21b   : > { %1450 = vmatpush1.msra.mxu1 %v1120_v57 }
 0x21c   : > { %1835 = vmatprep.subr.bf16.mxu1 %v2286_v52  ;;  %1499 = vmatmul.mubr.f32.vlgmr.msra.gmra.mrb[0].mxu1 %v2236_v62 }
 0x21d   : > { %1837 = vmatpush1.bf16.msra.mxu1 %v2282_v43  ;;  %1587 = vmatprep.mubr.f32.mxu1 %v2062_v0 }
 0x21e   : > { %1839 = vmatprep.subr.bf16.mxu1 %v2299_v1 }
 0x221   : > { %1841 = vmatpush1.bf16.msra.mxu1 %v2315_v18 }
 0x222   : > { %1843 = vmatprep.subr.bf16.mxu1 %v2331_v29 }
 0x225   : > { %1845 = vmatpush1.bf16.msra.mxu1 %v2337_v34 }
 0x226   : > { %1847 = vmatprep.subr.bf16.mxu1 %v2357_v58 }
 0x229   : > { %1849 = vmatpush1.bf16.msra.mxu1 %v2346_v46 }
 0x22a   : > { %1538 = vmatprep.subr.mxu1 %v2374_v16 }
 0x22d   : > { %1540 = vmatpush1.msra.mxu1 %v2399_v44 }
 0x22e   : > { %1589 = vmatmul.mubr.f32.vlgmr.msra.gmra.mrb[0].mxu1 %v2236_v62 }
 0x2da   : > { %v1173_v2 = vpop.f32.mrb[2].mxu0 }
 0x2db   : > { %v1175_v0 = vpop.f32.mrb[3].mxu0  ;;  %v1852_v43 = vadd.f32 %v1173_v2, %v916_v22 }
 0x2dc   : > { %v1854_v52 = vadd.f32 %v1175_v0, %v916_v22 }
 0x301   : > { %v1590_v1 = vpop.f32.mrb[0].mxu1 }
 0x302   : > { %v1853_v3 = vadd.f32 %v1852_v43, %v1590_v1  ;;  %v1592_v4 = vpop.f32.mrb[1].mxu1 }
 0x303   : > { %v1855_v5 = vadd.f32 %v1854_v52, %v1592_v4 }
 0x304   : > { %v1743_v6 = vmul.f32 -1.442695, %v1853_v3 }
 0x305   : > { %v1744_v8 = vmul.f32 -1.442695, %v1855_v5 }
 0x306   : > { %1947 = vpow2.f32 %v1743_v6 }
 0x307   : > { %1949 = vpow2.f32 %v1744_v8 }
 0x310   : > { %v1948_v9 = vpop.eup %1947 }
 0x311   : > { %v1950_v18 = vpop.eup %1949  ;;  %v1601_v23 = vadd.f32 1.0, %v1948_v9 }
 0x312   : > { %v1602_v24 = vadd.f32 1.0, %v1950_v18 }
 0x313   : > { %1951 = vrcp.f32 %v1601_v23 }
 0x314   : > { %1953 = vrcp.f32 %v1602_v24 }
 0x31d   : > { %v1952_v62 = vpop.eup %1951 }
 0x31e   : > { %v1954_v29 = vpop.eup %1953  ;;  %v1607_v32 = vmul.f32 %v1952_v62, %v1853_v3 }
 0x31f   : > { %v1608_v33 = vmul.f32 %v1954_v29, %v1855_v5 }
 0x321   : > { %v1609_v34 = vadd.f32 %v1608_v33, %v1607_v32 }
 0x323   : > { %1610 = vadd.xlane.f32.xlu0 %v1609_v34 }
 0x3b0   : > { %v1611_v49 = vpop.xlane.xlu0 %1610 }
 0x3b1   : > { %v1613_v46 = vmul.f32 0.00390625, %v1611_v49 }
 0x3b3   : > { %v1615_v56 = vmul.f32 %v1614_v45, %v1613_v46 }
 0x3b5   : > { %v1617_v58 = vsel %vm1616_vm11, %v1615_v56, 0.0 }
 0x3b6   : > { %v1618_v7 = vrot.slane %v1617_v58, 4 }
 0x3b8   : > { %v1619_v12 = vadd.f32 %v1618_v7, %v1617_v58 }
 0x3ba   : > { %v1620_v16 = vrot.slane %v1619_v12, 2 }
 0x3bc   : > { %v1621_v19 = vadd.f32 %v1620_v16, %v1619_v12 }
 0x3be   : > { %v1622_v25 = vrot.slane %v1621_v19, 1 }
 0x3c0   : > { %v1623_v44 = vadd.f32 %v1622_v25, %v1621_v19 }
 0x3c2   : > { %v1745_v50 = vmul.f32 -1.442695, %v1623_v44 }
 0x3c4   : > { %1955 = vpow2.f32 %v1745_v50 }
 0x3ce   : > { %v1956_v61 = vpop.eup %1955 }
 0x3cf   : > { %v1627_v10 = vadd.f32 1.0, %v1956_v61 }
 0x3d1   : > { %1957 = vrcp.f32 %v1627_v10 }
 0x3db   : > { %v1958_v63 = vpop.eup %1957 }
 0x3dc   : > { %v1630_v54 = vmul.f32 %v1958_v63, %v1623_v44 }
 0x3de   : > { %v1632_v51 = vmul.f32 %v1631_v15, %v1630_v54 }
 0x3e0   : > { %v1633_v53 = vsel %vm1616_vm11, %v1632_v51, 0.0 }
 0x3e1   : > { %1634 = vadd.xlane.f32.xlu1 %v1633_v53 }
 0x46e   : > { %v1635_v48 = vpop.xlane.xlu1 %1634 }
 0x46f   : > { %v1746_v60 = vmul.f32 -1.442695, %v1635_v48 }
 0x471   : > { %1959 = vpow2.f32 %v1746_v60 }
 0x47b   : > { %v1960_v41 = vpop.eup %1959 }
 0x47c   : > { %v1639_v30 = vadd.f32 1.0, %v1960_v41 }
 0x47e   : > { %1961 = vrcp.f32 %v1639_v30 }
 0x488   : > { %v1962_v57 = vpop.eup %1961 }
 0x489   : > { %v1642_v17 = vmul.f32 %v1962_v57, %v1607_v32  ;;  %v1643_v20 = vmul.f32 %v1962_v57, %v1608_v33 }
 0x48b   : > { %1644 = vst [vmem:[%s313_s19] sm:$0xff] %v1642_v17  ;;  %1645 = vst [vmem:[%s313_s19 + $0x8] sm:$0xff] %v1643_v20 }
 0x48c   : > { %2004 = shalt.err (!%p2001_p7)
}
 0x48d   : > { %s2005_s21 = scalar_lea.hbm %s2521_s26, 256  ;;  %s2009_s17 = scalar_lea.hbm %s2571_s8, 512 }
 0x48e   : > { %p2006_p8 = scmp.ne.s32.totalorder %s2521_s26, %s2005_s21  ;;  %p2010_p1 = scmp.lt.u32.totalorder %s2521_s26, %s2571_s8 }
 0x48f   : > { %p2011_p0 = scmp.lt.u32.totalorder %s2009_s17, %s2005_s21  ;;  %p2013_p6 = scmp.lt.u32.totalorder %s2005_s21, %s2521_s26 }
 0x490   : > { %p2007_p11 = pnand %p2006_p8, %p2588_p9 }
 0x491   : > { %p2012_p5 = por %p2011_p0, %p2010_p1 }
 0x492   : > { %p2008_p13 = pneg %p2007_p11 }
 0x493   : > { %p2014_p10 = por %p2013_p6, %p2012_p5 }
 0x495   : > { %p2015_p12 = pnand %p2014_p10, %p2008_p13 }
 0x497   : > { %2018 = shalt.err (!%p2015_p12)
}
 0x498   : > { %1878 = dma.vmem_to_hbm [thread:$0]  (%p2588_p9), %s2523_s23, 256, %s2521_s26, %s1647_s10  }
 0x499 PF: > { %p1890_p2 = scmp.ge.s32.totalorder %s2057_s30, 2  ;;  %s1673_s25 = sand.u32 1, %s2045_s27  }
 0x49a   : > { %p2589_p3 = scmp.ne.s32.totalorder %s2579_s16, 0  ;;  %s1674_s12 = scalar_lea.sflag [#allocation4], %s1673_s25 }
 0x49c   : > { %p1885_p4 = pnand %p1890_p2, %p2589_p3 }
 0x49e   : > { %2040 = dma.done.wait (!%p1885_p4), %s1674_s12, 256  }
 0x49f   : > { %2042 = vsyncadd (!%p1885_p4), %s1674_s12, 4294967040  ;;  %p19_p7 = scmp.ge.s32.totalorder %s2143_s11, 4   ;;  %s2590_s27 = smov %s2049_s28 }
 0x4a0   : > { %s2591_s28 = smov %s2053_s29  ;;  %s2592_s29 = smov %s2154_s14 }
 0x4a1   : > { %s2593_s30 = smov %s2143_s11  ;;  %21 = sbr.rel (!%p19_p7) target bundleno = 4 (0x4), region = 92 }
 0x4a8   :  { %1679 = vsyncpa [#allocation3], 1 }
 0x4a9   :  { %1681 = vsyncpa [#allocation3 + $0x1], 1 }
 0x4aa   :  { %1682 = vsyncpa [#allocation4], 1 }
 0x4ab   :  { %1684 = vsyncpa [#allocation4 + $0x1], 1 }

</bundles_post_ra>
